<compile_context>
chip_gen: v5e
topology: v5e:2x2
jax: 0.10.0
libtpu: 0.0.40
codegen_flags: <defaults>
</compile_context>

<pallas_src>
import jax
import jax.numpy as jnp
from jax.experimental import pallas as pl
from jax.experimental.pallas import tpu as pltpu

_VMEM = pl.BlockSpec(memory_space=pltpu.MemorySpace.VMEM)

LANE = 128      # lane width: last-dim padding target
SUBLANE = 8     # sublane width: second-to-last padding target


def _round_up(v, m):
    return ((v + m - 1) // m) * m


def _pad2d(x, rows, cols, dtype=None):
    r, c = x.shape
    out = jnp.pad(x, ((0, rows - r), (0, cols - c)))
    return out.astype(dtype) if dtype is not None else out


# ----------------------------- Pallas kernel -------------------------------

def _fused_gnn_kernel(a_ref, x_ref,
                      wc1_ref, bc1_ref, wc2_ref, bc2_ref, wc3_ref, bc3_ref,
                      p_ref, flags_ref,
                      wm1h_ref, wm1f_ref, bm1_ref, wm2_ref, bm2_ref,
                      o_ref):
    # A_hat is loaded into VMEM once and reused by all three GCN layers.
    a = a_ref[...]                                     # bf16 [Np, Np]

    def gcn(h_bf16, w_ref, b_ref):
        # GCNConv: (A_hat @ (h @ W)) + b, then ReLU.  bf16 MXU inputs,
        # f32 accumulation, f32 epilogue on the VPU.
        xw = jnp.dot(h_bf16, w_ref[...], preferred_element_type=jnp.float32)
        agg = jnp.dot(a, xw.astype(jnp.bfloat16),
                      preferred_element_type=jnp.float32)
        return jnp.maximum(agg + b_ref[...], 0.0)

    h = gcn(x_ref[...], wc1_ref, bc1_ref)              # layer 1 (+ReLU)
    # F.dropout(training=False) -> identity
    h = gcn(h.astype(jnp.bfloat16), wc2_ref, bc2_ref)  # layer 2 (+ReLU)
    h = gcn(h.astype(jnp.bfloat16), wc3_ref, bc3_ref)  # layer 3 (+ReLU)

    # global_mean_pool as a matmul with the pooling matrix.
    pooled = jnp.dot(p_ref[...], h.astype(jnp.bfloat16),
                     preferred_element_type=jnp.float32)     # [Gp, Hp]

    # MLP head; concat([pooled, flags]) @ W1 done as a split matmul.
    z = (jnp.dot(pooled.astype(jnp.bfloat16), wm1h_ref[...],
                 preferred_element_type=jnp.float32)
         + jnp.dot(flags_ref[...], wm1f_ref[...],
                   preferred_element_type=jnp.float32)
         + bm1_ref[...])
    z = jnp.maximum(z, 0.0)
    # nn.Dropout is identity at inference time.
    out = jnp.dot(z.astype(jnp.bfloat16), wm2_ref[...],
                  preferred_element_type=jnp.float32) + bm2_ref[...]
    o_ref[...] = out                                   # lane-dense [Gp, 128]


# ------------------------------ JAX wrapper --------------------------------

def gnn_forward(params, x, a_hat, pool_mat, flags):
    n, f = x.shape
    g, n_flags = flags.shape
    hidden = params["w_c1"].shape[1]
    out_dim = params["w_mlp2"].shape[1]

    # Padded (MXU/lane-aligned) sizes.  Zero padding is exact.
    n_p = _round_up(n, LANE)
    f_p = _round_up(f, LANE)
    h_p = _round_up(hidden, LANE)
    g_p = _round_up(g, SUBLANE)
    fl_p = _round_up(n_flags, LANE)
    o_p = _round_up(out_dim, LANE)

    bf = jnp.bfloat16
    args = (
        _pad2d(a_hat, n_p, n_p, bf),                          # A_hat
        _pad2d(x, n_p, f_p, bf),                              # node features
        _pad2d(params["w_c1"], f_p, h_p, bf),
        _pad2d(params["b_c1"].reshape(1, -1), 1, h_p),
        _pad2d(params["w_c2"], h_p, h_p, bf),
        _pad2d(params["b_c2"].reshape(1, -1), 1, h_p),
        _pad2d(params["w_c3"], h_p, h_p, bf),
        _pad2d(params["b_c3"].reshape(1, -1), 1, h_p),
        _pad2d(pool_mat, g_p, n_p, bf),                       # mean-pool matrix
        _pad2d(flags, g_p, fl_p, bf),                         # graph flags
        _pad2d(params["w_mlp1"][:hidden, :], h_p, h_p, bf),   # W1 (pooled part)
        _pad2d(params["w_mlp1"][hidden:, :], fl_p, h_p, bf),  # W1 (flags part)
        _pad2d(params["b_mlp1"].reshape(1, -1), 1, h_p),
        _pad2d(params["w_mlp2"], h_p, o_p, bf),
        _pad2d(params["b_mlp2"].reshape(1, -1), 1, o_p),
    )

    out_padded = pl.pallas_call(
        _fused_gnn_kernel,
        out_shape=jax.ShapeDtypeStruct((g_p, o_p), jnp.float32),
        in_specs=[_VMEM] * len(args),
        out_specs=_VMEM,
    )(*args)
    return out_padded[:g, :out_dim]


def build_normalized_adjacency(edge_index, num_nodes):
    """A_hat = D^-1/2 (A + I) D^-1/2, matching PyG GCNConv (scatter-add:
    duplicate edges accumulate in both degree and aggregation)."""
    src, dst = edge_index[0], edge_index[1]
    a = jnp.zeros((num_nodes, num_nodes), jnp.float32)
    # message flows src -> dst: row = dst (aggregation target), col = src
    a = a.at[dst, src].add(1.0)
    a = a + jnp.eye(num_nodes, dtype=jnp.float32)          # self loops
    deg = jnp.sum(a, axis=1)
    d_inv_sqrt = jnp.where(deg > 0, 1.0 / jnp.sqrt(deg), 0.0)
    return d_inv_sqrt[:, None] * a * d_inv_sqrt[None, :]


def build_pool_matrix(batch, num_graphs):
    """P[g, i] = 1/|V_g| if node i belongs to graph g (global_mean_pool)."""
    onehot = (batch[None, :] == jnp.arange(num_graphs)[:, None]).astype(jnp.float32)
    counts = jnp.maximum(jnp.sum(onehot, axis=1, keepdims=True), 1.0)
    return onehot / counts


def init_params(key, input_dim, hidden_dim, output_dim):
    ks = jax.random.split(key, 10)

    def lin(k, fan_in, fan_out):
        scale = 1.0 / jnp.sqrt(jnp.float32(fan_in))
        return jax.random.uniform(k, (fan_in, fan_out), jnp.float32, -scale, scale)

    return {
        "w_c1": lin(ks[0], input_dim, hidden_dim),
        "b_c1": jnp.zeros((hidden_dim,), jnp.float32),
        "w_c2": lin(ks[1], hidden_dim, hidden_dim),
        "b_c2": jnp.zeros((hidden_dim,), jnp.float32),
        "w_c3": lin(ks[2], hidden_dim, hidden_dim),
        "b_c3": jnp.zeros((hidden_dim,), jnp.float32),
        "w_mlp1": lin(ks[3], hidden_dim + 5, hidden_dim),
        "b_mlp1": jax.random.uniform(ks[4], (hidden_dim,), jnp.float32, -0.1, 0.1),
        "w_mlp2": lin(ks[5], hidden_dim, output_dim),
        "b_mlp2": jax.random.uniform(ks[6], (output_dim,), jnp.float32, -0.1, 0.1),
    }


# ------------------------------- demo --------------------------------------

if __name__ == "__main__":
    INPUT_DIM = 8
    HIDDEN_DIM = 32
    OUTPUT_DIM = 2
    NUM_NODES = 32       # 2 graphs x 16 nodes
    NUM_GRAPHS = 2
    NUM_EDGES = 64

    key = jax.random.PRNGKey(0)
    k_x, k_e1, k_e2, k_flags, k_params = jax.random.split(key, 5)

    # node features [N, F]
    x = jax.random.normal(k_x, (NUM_NODES, INPUT_DIM), jnp.float32)

    # random intra-graph edges: graph 0 -> nodes [0,16), graph 1 -> nodes [16,32)
    src0 = jax.random.randint(k_e1, (NUM_EDGES // 2,), 0, 16)
    dst0 = jax.random.randint(k_e2, (NUM_EDGES // 2,), 0, 16)
    src1 = src0 + 16
    dst1 = dst0 + 16
    edge_index = jnp.stack([jnp.concatenate([src0, src1]),
                            jnp.concatenate([dst0, dst1])], axis=0)

    # batch vector (graph id per node) and graph-level flags [G, 5]
    batch = jnp.concatenate([jnp.zeros(16, jnp.int32), jnp.ones(16, jnp.int32)])
    flags = jax.random.normal(k_flags, (NUM_GRAPHS, 5), jnp.float32)

    a_hat = build_normalized_adjacency(edge_index, NUM_NODES)
    pool_mat = build_pool_matrix(batch, NUM_GRAPHS)

    params = init_params(k_params, INPUT_DIM, HIDDEN_DIM, OUTPUT_DIM)

    out = gnn_forward(params, x, a_hat, pool_mat, flags)
    out = jax.block_until_ready(out)
    assert out.shape == (NUM_GRAPHS, OUTPUT_DIM)
    assert jnp.all(jnp.isfinite(out))
    print("KERNEL_OK")
</pallas_src>

<mosaic_0001>
module attributes {stable_mosaic.version = 11 : i64} {
  func.func @_fused_gnn_kernel(%arg0: memref<128x128xbf16, #tpu.memory_space<vmem>>, %arg1: memref<128x128xbf16, #tpu.memory_space<vmem>>, %arg2: memref<128x128xbf16, #tpu.memory_space<vmem>>, %arg3: memref<1x128xf32, #tpu.memory_space<vmem>>, %arg4: memref<128x128xbf16, #tpu.memory_space<vmem>>, %arg5: memref<1x128xf32, #tpu.memory_space<vmem>>, %arg6: memref<128x128xbf16, #tpu.memory_space<vmem>>, %arg7: memref<1x128xf32, #tpu.memory_space<vmem>>, %arg8: memref<8x128xbf16, #tpu.memory_space<vmem>>, %arg9: memref<8x128xbf16, #tpu.memory_space<vmem>>, %arg10: memref<128x128xbf16, #tpu.memory_space<vmem>>, %arg11: memref<128x128xbf16, #tpu.memory_space<vmem>>, %arg12: memref<1x128xf32, #tpu.memory_space<vmem>>, %arg13: memref<128x128xbf16, #tpu.memory_space<vmem>>, %arg14: memref<1x128xf32, #tpu.memory_space<vmem>>, %arg15: memref<8x128xf32, #tpu.memory_space<vmem>>) attributes {dimension_semantics = [], scalar_prefetch = 0 : i64, scratch_operands = 0 : i64, tpu.core_type = #tpu.core_type<tc>} {
    %c0 = arith.constant 0 : index
    %c0_0 = arith.constant 0 : index
    %0 = vector.load %arg0[%c0, %c0_0] : memref<128x128xbf16, #tpu.memory_space<vmem>>, vector<128x128xbf16>
    %c0_1 = arith.constant 0 : index
    %c0_2 = arith.constant 0 : index
    %1 = vector.load %arg1[%c0_1, %c0_2] : memref<128x128xbf16, #tpu.memory_space<vmem>>, vector<128x128xbf16>
    %c0_3 = arith.constant 0 : index
    %c0_4 = arith.constant 0 : index
    %2 = vector.load %arg2[%c0_3, %c0_4] : memref<128x128xbf16, #tpu.memory_space<vmem>>, vector<128x128xbf16>
    %cst = arith.constant dense<0.000000e+00> : vector<128x128xf32>
    %3 = tpu.matmul %1, %2, %cst {dimension_numbers = #tpu.dot_dimension_numbers<[1], [0], [0], [1], [0, 0, 1, 1], [], []>} : vector<128x128xbf16>, vector<128x128xbf16>, vector<128x128xf32> -> vector<128x128xf32>
    %4 = arith.truncf %3 : vector<128x128xf32> to vector<128x128xbf16>
    %cst_5 = arith.constant dense<0.000000e+00> : vector<128x128xf32>
    %5 = tpu.matmul %0, %4, %cst_5 {dimension_numbers = #tpu.dot_dimension_numbers<[1], [0], [0], [1], [0, 0, 1, 1], [], []>} : vector<128x128xbf16>, vector<128x128xbf16>, vector<128x128xf32> -> vector<128x128xf32>
    %c0_6 = arith.constant 0 : index
    %c0_7 = arith.constant 0 : index
    %6 = vector.load %arg3[%c0_6, %c0_7] : memref<1x128xf32, #tpu.memory_space<vmem>>, vector<1x128xf32>
    %7 = vector.broadcast %6 : vector<1x128xf32> to vector<128x128xf32>
    %8 = arith.addf %5, %7 : vector<128x128xf32>
    %cst_8 = arith.constant 0.000000e+00 : f32
    %9 = vector.broadcast %cst_8 : f32 to vector<128x128xf32>
    %10 = arith.maximumf %8, %9 : vector<128x128xf32>
    %11 = arith.truncf %10 : vector<128x128xf32> to vector<128x128xbf16>
    %c0_9 = arith.constant 0 : index
    %c0_10 = arith.constant 0 : index
    %12 = vector.load %arg4[%c0_9, %c0_10] : memref<128x128xbf16, #tpu.memory_space<vmem>>, vector<128x128xbf16>
    %cst_11 = arith.constant dense<0.000000e+00> : vector<128x128xf32>
    %13 = tpu.matmul %11, %12, %cst_11 {dimension_numbers = #tpu.dot_dimension_numbers<[1], [0], [0], [1], [0, 0, 1, 1], [], []>} : vector<128x128xbf16>, vector<128x128xbf16>, vector<128x128xf32> -> vector<128x128xf32>
    %14 = arith.truncf %13 : vector<128x128xf32> to vector<128x128xbf16>
    %cst_12 = arith.constant dense<0.000000e+00> : vector<128x128xf32>
    %15 = tpu.matmul %0, %14, %cst_12 {dimension_numbers = #tpu.dot_dimension_numbers<[1], [0], [0], [1], [0, 0, 1, 1], [], []>} : vector<128x128xbf16>, vector<128x128xbf16>, vector<128x128xf32> -> vector<128x128xf32>
    %c0_13 = arith.constant 0 : index
    %c0_14 = arith.constant 0 : index
    %16 = vector.load %arg5[%c0_13, %c0_14] : memref<1x128xf32, #tpu.memory_space<vmem>>, vector<1x128xf32>
    %17 = vector.broadcast %16 : vector<1x128xf32> to vector<128x128xf32>
    %18 = arith.addf %15, %17 : vector<128x128xf32>
    %cst_15 = arith.constant 0.000000e+00 : f32
    %19 = vector.broadcast %cst_15 : f32 to vector<128x128xf32>
    %20 = arith.maximumf %18, %19 : vector<128x128xf32>
    %21 = arith.truncf %20 : vector<128x128xf32> to vector<128x128xbf16>
    %c0_16 = arith.constant 0 : index
    %c0_17 = arith.constant 0 : index
    %22 = vector.load %arg6[%c0_16, %c0_17] : memref<128x128xbf16, #tpu.memory_space<vmem>>, vector<128x128xbf16>
    %cst_18 = arith.constant dense<0.000000e+00> : vector<128x128xf32>
    %23 = tpu.matmul %21, %22, %cst_18 {dimension_numbers = #tpu.dot_dimension_numbers<[1], [0], [0], [1], [0, 0, 1, 1], [], []>} : vector<128x128xbf16>, vector<128x128xbf16>, vector<128x128xf32> -> vector<128x128xf32>
    %24 = arith.truncf %23 : vector<128x128xf32> to vector<128x128xbf16>
    %cst_19 = arith.constant dense<0.000000e+00> : vector<128x128xf32>
    %25 = tpu.matmul %0, %24, %cst_19 {dimension_numbers = #tpu.dot_dimension_numbers<[1], [0], [0], [1], [0, 0, 1, 1], [], []>} : vector<128x128xbf16>, vector<128x128xbf16>, vector<128x128xf32> -> vector<128x128xf32>
    %c0_20 = arith.constant 0 : index
    %c0_21 = arith.constant 0 : index
    %26 = vector.load %arg7[%c0_20, %c0_21] : memref<1x128xf32, #tpu.memory_space<vmem>>, vector<1x128xf32>
    %27 = vector.broadcast %26 : vector<1x128xf32> to vector<128x128xf32>
    %28 = arith.addf %25, %27 : vector<128x128xf32>
    %cst_22 = arith.constant 0.000000e+00 : f32
    %29 = vector.broadcast %cst_22 : f32 to vector<128x128xf32>
    %30 = arith.maximumf %28, %29 : vector<128x128xf32>
    %c0_23 = arith.constant 0 : index
    %c0_24 = arith.constant 0 : index
    %31 = vector.load %arg8[%c0_23, %c0_24] : memref<8x128xbf16, #tpu.memory_space<vmem>>, vector<8x128xbf16>
    %32 = arith.truncf %30 : vector<128x128xf32> to vector<128x128xbf16>
    %cst_25 = arith.constant dense<0.000000e+00> : vector<8x128xf32>
    %33 = tpu.matmul %31, %32, %cst_25 {dimension_numbers = #tpu.dot_dimension_numbers<[1], [0], [0], [1], [0, 0, 1, 1], [], []>} : vector<8x128xbf16>, vector<128x128xbf16>, vector<8x128xf32> -> vector<8x128xf32>
    %34 = arith.truncf %33 : vector<8x128xf32> to vector<8x128xbf16>
    %c0_26 = arith.constant 0 : index
    %c0_27 = arith.constant 0 : index
    %35 = vector.load %arg10[%c0_26, %c0_27] : memref<128x128xbf16, #tpu.memory_space<vmem>>, vector<128x128xbf16>
    %cst_28 = arith.constant dense<0.000000e+00> : vector<8x128xf32>
    %36 = tpu.matmul %34, %35, %cst_28 {dimension_numbers = #tpu.dot_dimension_numbers<[1], [0], [0], [1], [0, 0, 1, 1], [], []>} : vector<8x128xbf16>, vector<128x128xbf16>, vector<8x128xf32> -> vector<8x128xf32>
    %c0_29 = arith.constant 0 : index
    %c0_30 = arith.constant 0 : index
    %37 = vector.load %arg9[%c0_29, %c0_30] : memref<8x128xbf16, #tpu.memory_space<vmem>>, vector<8x128xbf16>
    %c0_31 = arith.constant 0 : index
    %c0_32 = arith.constant 0 : index
    %38 = vector.load %arg11[%c0_31, %c0_32] : memref<128x128xbf16, #tpu.memory_space<vmem>>, vector<128x128xbf16>
    %cst_33 = arith.constant dense<0.000000e+00> : vector<8x128xf32>
    %39 = tpu.matmul %37, %38, %cst_33 {dimension_numbers = #tpu.dot_dimension_numbers<[1], [0], [0], [1], [0, 0, 1, 1], [], []>} : vector<8x128xbf16>, vector<128x128xbf16>, vector<8x128xf32> -> vector<8x128xf32>
    %40 = arith.addf %36, %39 : vector<8x128xf32>
    %c0_34 = arith.constant 0 : index
    %c0_35 = arith.constant 0 : index
    %41 = vector.load %arg12[%c0_34, %c0_35] : memref<1x128xf32, #tpu.memory_space<vmem>>, vector<1x128xf32>
    %42 = vector.broadcast %41 : vector<1x128xf32> to vector<8x128xf32>
    %43 = arith.addf %40, %42 : vector<8x128xf32>
    %cst_36 = arith.constant 0.000000e+00 : f32
    %44 = vector.broadcast %cst_36 : f32 to vector<8x128xf32>
    %45 = arith.maximumf %43, %44 : vector<8x128xf32>
    %46 = arith.truncf %45 : vector<8x128xf32> to vector<8x128xbf16>
    %c0_37 = arith.constant 0 : index
    %c0_38 = arith.constant 0 : index
    %47 = vector.load %arg13[%c0_37, %c0_38] : memref<128x128xbf16, #tpu.memory_space<vmem>>, vector<128x128xbf16>
    %cst_39 = arith.constant dense<0.000000e+00> : vector<8x128xf32>
    %48 = tpu.matmul %46, %47, %cst_39 {dimension_numbers = #tpu.dot_dimension_numbers<[1], [0], [0], [1], [0, 0, 1, 1], [], []>} : vector<8x128xbf16>, vector<128x128xbf16>, vector<8x128xf32> -> vector<8x128xf32>
    %c0_40 = arith.constant 0 : index
    %c0_41 = arith.constant 0 : index
    %49 = vector.load %arg14[%c0_40, %c0_41] : memref<1x128xf32, #tpu.memory_space<vmem>>, vector<1x128xf32>
    %50 = vector.broadcast %49 : vector<1x128xf32> to vector<8x128xf32>
    %51 = arith.addf %48, %50 : vector<8x128xf32>
    %c0_42 = arith.constant 0 : index
    %c0_43 = arith.constant 0 : index
    %52 = vector.load %arg15[%c0_42, %c0_43] : memref<8x128xf32, #tpu.memory_space<vmem>>, vector<8x128xf32>
    tpu.vector_store %arg15[%c0_42, %c0_43], %51 {strides = array<i32>} : memref<8x128xf32, #tpu.memory_space<vmem>>, vector<8x128xf32>,
    return
  }
}

</mosaic_0001>

<bundles_post_ra>
// kernel: tpu_custom_call.1
= control target key start
LH: loop header
LB: loop body
LE: loop exit
PB: predicated region body
PF: predicated region fallthrough
CT: control target
= control target key end

     0   :  { %20 = vsyncpa [#allocation3], 0  ;;  %s2085_s0 = inlined_call_operand.hbm [shape: bf16[128,128], index: 0, kind: input, shape index: {}]   ;;  %s2086_s1 = inlined_call_operand.hbm [shape: bf16[128,128], index: 1, kind: input, shape index: {}]   ;;  %s2087_s2 = inlined_call_operand.hbm [shape: bf16[128,128], index: 2, kind: input, shape index: {}]   ;;  %s2088_s3 = inlined_call_operand.hbm [shape: f32[1,128], index: 3, kind: input, shape index: {}]   ;;  %s2089_s4 = inlined_call_operand.hbm [shape: bf16[128,128], index: 4, kind: input, shape index: {}]   ;;  %s2090_s5 = inlined_call_operand.hbm [shape: f32[1,128], index: 5, kind: input, shape index: {}]   ;;  %s2091_s6 = inlined_call_operand.hbm [shape: bf16[128,128], index: 6, kind: input, shape index: {}]   ;;  %s2092_s7 = inlined_call_operand.hbm [shape: f32[1,128], index: 7, kind: input, shape index: {}]   ;;  %s2093_s8 = inlined_call_operand.vmem [shape: bf16[8,128], index: 8, kind: input, shape index: {}]   ;;  %s2094_s9 = inlined_call_operand.vmem [shape: bf16[8,128], index: 9, kind: input, shape index: {}]   ;;  %s2095_s10 = inlined_call_operand.hbm [shape: bf16[128,128], index: 10, kind: input, shape index: {}]   ;;  %s2096_s11 = inlined_call_operand.hbm [shape: bf16[128,128], index: 11, kind: input, shape index: {}]   ;;  %s2097_s12 = inlined_call_operand.vmem [shape: f32[1,128], index: 12, kind: input, shape index: {}]   ;;  %s2098_s13 = inlined_call_operand.hbm [shape: bf16[128,128], index: 13, kind: input, shape index: {}]   ;;  %s2099_s14 = inlined_call_operand.vmem [shape: f32[1,128], index: 14, kind: input, shape index: {}]   ;;  %s2100_s15 = inlined_call_operand.hbm [shape: f32[8,128], index: 15, kind: output, shape index: {}]  }
   0x1   :  { %21 = vsyncpa [#allocation6], 0 }
   0x2   :  { %22 = vsyncpa [#allocation9], 0 }
   0x3   :  { %23 = vsyncpa [#allocation12], 0 }
   0x4   :  { %24 = vsyncpa [#allocation15], 0 }
   0x5   :  { %25 = vsyncpa [#allocation18], 0 }
   0x6   :  { %26 = vsyncpa [#allocation4], 0  ;;  %s44_s20 = sshll.u32 %s2086_s1, 4  ;;  %s1876_s21 = smov [#allocation5]   ;;  %s45_s20 = int_to_ptr.hbm [resolvable:$true] %s44_s20 }
   0x7   :  { %s46_s22 = sshll.u32 %s1876_s21, 4  ;;  %s71_s25 = sshll.u32 %s2088_s3, 4  ;;  %s47_s22 = int_to_ptr.vmem [resolvable:$true] %s46_s22  ;;  %s72_s25 = int_to_ptr.hbm [resolvable:$true] %s71_s25 }
   0x8   :  { %s1877_s26 = smov 64   ;;  %s1878_s27 = smov 4  }
   0x9   :  { %52 = dma.hbm_to_vmem [thread:$0]  %s45_s20, 1024, %s47_s22, [#allocation6], %s1877_s26, %s1877_s26, %s1878_s27  }
   0xa   :  { %s1879_s28 = smov [#allocation8]   ;;  %s95_s1 = sshll.u32 %s2090_s5, 4  ;;  %s96_s1 = int_to_ptr.hbm [resolvable:$true] %s95_s1 }
   0xb   :  { %s73_s29 = sshll.u32 %s1879_s28, 4  ;;  %s119_s3 = sshll.u32 %s2092_s7, 4  ;;  %s74_s29 = int_to_ptr.vmem [resolvable:$true] %s73_s29  ;;  %s120_s3 = int_to_ptr.hbm [resolvable:$true] %s119_s3 }
   0xc   :  { %76 = dma.hbm_to_vmem [thread:$0]  %s72_s25, 16, %s74_s29, [#allocation9]  }
   0xd   :  { %s1880_s19 = smov [#allocation11]   ;;  %s1881_s20 = smov [#allocation14]  }
   0xe   :  { %s97_s21 = sshll.u32 %s1880_s19, 4  ;;  %s121_s22 = sshll.u32 %s1881_s20, 4  ;;  %s98_s21 = int_to_ptr.vmem [resolvable:$true] %s97_s21  ;;  %s122_s22 = int_to_ptr.vmem [resolvable:$true] %s121_s22 }
   0xf   :  { %100 = dma.hbm_to_vmem [thread:$0]  %s96_s1, 16, %s98_s21, [#allocation12]  }
  0x10   :  { %s146_s28 = sshll.u32 %s2096_s11, 4  ;;  %s31_s29 = sshll.u32 %s2085_s0, 4  ;;  %s147_s28 = int_to_ptr.hbm [resolvable:$true] %s146_s28  ;;  %s32_s29 = int_to_ptr.hbm [resolvable:$true] %s31_s29 }
  0x11   :  { %124 = dma.hbm_to_vmem [thread:$0]  %s120_s3, 16, %s122_s22, [#allocation15]  }
  0x12   :  { %s1882_s30 = smov [#allocation17]   ;;  %s1883_s16 = smov [#allocation2]  }
  0x13   :  { %s148_s7 = sshll.u32 %s1882_s30, 4  ;;  %s33_s1 = sshll.u32 %s1883_s16, 4  ;;  %s149_s7 = int_to_ptr.vmem [resolvable:$true] %s148_s7  ;;  %s34_s1 = int_to_ptr.vmem [resolvable:$true] %s33_s1 }
  0x14   :  { %154 = dma.hbm_to_vmem [thread:$0]  %s147_s28, 1024, %s149_s7, [#allocation18], %s1877_s26, %s1877_s26, %s1878_s27  }
  0x15   :  { %s57_s11 = sshll.u32 %s2087_s2, 4  ;;  %s81_s19 = sshll.u32 %s2089_s4, 4  ;;  %s58_s11 = int_to_ptr.hbm [resolvable:$true] %s57_s11  ;;  %s82_s19 = int_to_ptr.hbm [resolvable:$true] %s81_s19 }
  0x16   :  { %39 = dma.hbm_to_vmem [thread:$0]  %s32_s29, 1024, %s34_s1, [#allocation3], %s1877_s26, %s1877_s26, %s1878_s27  }
  0x17   :  { %s1884_s21 = smov [#allocation7]   ;;  %s1885_s22 = smov [#allocation10]  }
  0x18   :  { %s59_s20 = sshll.u32 %s1884_s21, 4  ;;  %s83_s2 = sshll.u32 %s1885_s22, 4  ;;  %s60_s20 = int_to_ptr.vmem [resolvable:$true] %s59_s20  ;;  %s84_s2 = int_to_ptr.vmem [resolvable:$true] %s83_s2 }
  0x19   :  { %65 = dma.hbm_to_vmem [thread:$0]  %s58_s11, 1024, %s60_s20, [#allocation6], %s1877_s26, %s1877_s26, %s1878_s27  }
  0x1a   :  { %s105_s28 = sshll.u32 %s2091_s6, 4  ;;  %s133_s25 = sshll.u32 %s2095_s10, 4  ;;  %s106_s28 = int_to_ptr.hbm [resolvable:$true] %s105_s28  ;;  %s134_s25 = int_to_ptr.hbm [resolvable:$true] %s133_s25 }
  0x1b   :  { %89 = dma.hbm_to_vmem [thread:$0]  %s82_s19, 1024, %s84_s2, [#allocation9], %s1877_s26, %s1877_s26, %s1878_s27  }
  0x1c   :  { %s1886_s29 = smov [#allocation13]   ;;  %s1887_s7 = smov [#allocation16]  }
  0x1d   :  { %s107_s30 = sshll.u32 %s1886_s29, 4  ;;  %s135_s6 = sshll.u32 %s1887_s7, 4  ;;  %s108_s30 = int_to_ptr.vmem [resolvable:$true] %s107_s30  ;;  %s136_s6 = int_to_ptr.vmem [resolvable:$true] %s135_s6 }
  0x1e   :  { %113 = dma.hbm_to_vmem [thread:$0]  %s106_s28, 1024, %s108_s30, [#allocation12], %s1877_s26, %s1877_s26, %s1878_s27  }
  0x1f   :  { %s161_s17 = sshll.u32 %s2098_s13, 4  ;;  %s1888_s10 = smov [#allocation19]   ;;  %s162_s17 = int_to_ptr.hbm [resolvable:$true] %s161_s17 }
  0x20   :  { %141 = dma.hbm_to_vmem [thread:$0]  %s134_s25, 1024, %s136_s6, [#allocation15], %s1877_s26, %s1877_s26, %s1878_s27  }
  0x21   :  { %s163_s18 = sshll.u32 %s1888_s10, 4  ;;  %s164_s18 = int_to_ptr.vmem [resolvable:$true] %s163_s18 }
  0x22   :  { %169 = dma.hbm_to_vmem [thread:$0]  %s162_s17, 1024, %s164_s18, [#allocation18], %s1877_s26, %s1877_s26, %s1878_s27  }
  0x23   :  { %1862 = dma.done.wait [#allocation3], 1024  }
  0x24   :  { %1863 = vsyncadd [#allocation3], 4294966272 }
  0x25   :  { %1864 = dma.done.wait [#allocation6], 2048  }
  0x26   :  { %1865 = vsyncadd [#allocation6], 4294965248 }
  0x27   :  { %1866 = dma.done.wait [#allocation9], 1040  }
  0x28   :  { %1867 = vsyncadd [#allocation9], 4294966256 }
  0x29   :  { %1868 = dma.done.wait [#allocation12], 1040  }
  0x2a   :  { %1869 = vsyncadd [#allocation12], 4294966256 }
  0x2b   :  { %1870 = dma.done.wait [#allocation15], 1040  }
  0x2c   :  { %1871 = vsyncadd [#allocation15], 4294966256 }
  0x2d   :  { %1872 = dma.done.wait [#allocation18], 2048  }
  0x2e   :  { %1873 = vsyncadd [#allocation18], 4294965248  ;;  %v1498_v0 = vld [vmem:[#allocation7 + $0x38] sm:$0xff]  ;;  %v1497_v1 = vld [vmem:[#allocation7 + $0x30] sm:$0xff]  ;;  %s1889_s19 = smov [#allocation20]   ;;  %s1204_s2 = sshll.u32 %s2100_s15, 4  ;;  %s1205_s2 = int_to_ptr.hbm [resolvable:$true] %s1204_s2 }
  0x2f   :  { %360 = vmatpush.bf16.msra.mxu0 %v1498_v0  ;;  %1539 = vmatpush.bf16.msra.mxu2 %v1498_v0  ;;  %v1496_v2 = vld [vmem:[#allocation7 + $0x28] sm:$0xff]  ;;  %v1495_v3 = vld [vmem:[#allocation7 + $0x20] sm:$0xff]  ;;  %v1494_v4 = vld [vmem:[#allocation7 + $0x18] sm:$0xff]  ;;  %s1202_s21 = sshll.u32 %s1889_s19, 4  ;;  %s1203_s21 = int_to_ptr.vmem [resolvable:$true] %s1202_s21 }
  0x30   :  { %v1493_v5 = vld [vmem:[#allocation7 + $0x10] sm:$0xff]  ;;  %v1492_v6 = vld [vmem:[#allocation7 + $0x8] sm:$0xff]  ;;  %v1491_v7 = vld [vmem:[#allocation7] sm:$0xff] }
  0x31   :  { %v1483_v8 = vld [vmem:[#allocation5] sm:$0xff]  ;;  %v1489_v9 = vld [vmem:[#allocation5 + $0x30] sm:$0xff]  ;;  %v1484_v10 = vld [vmem:[#allocation5 + $0x8] sm:$0xff] }
  0x32   :  { %v1490_v11 = vld [vmem:[#allocation5 + $0x38] sm:$0xff]  ;;  %v1485_v12 = vld [vmem:[#allocation5 + $0x10] sm:$0xff]  ;;  %v1487_v14 = vld [vmem:[#allocation5 + $0x20] sm:$0xff] }
  0x33   :  { %361 = vmatpush.bf16.msra.mxu0 %v1497_v1  ;;  %1540 = vmatpush.bf16.msra.mxu2 %v1497_v1  ;;  %v1486_v13 = vld [vmem:[#allocation5 + $0x18] sm:$0xff]  ;;  %v1488_v15 = vld [vmem:[#allocation5 + $0x28] sm:$0xff]  ;;  %v2027_v40 = vld [vmem:[#allocation2] sm:$0xff] }
  0x34   :  { %v2030_v41 = vld [vmem:[#allocation2 + $0x8] sm:$0xff]  ;;  %v2033_v42 = vld [vmem:[#allocation2 + $0x10] sm:$0xff]  ;;  %v2036_v43 = vld [vmem:[#allocation2 + $0x18] sm:$0xff] }
  0x35   :  { %v2039_v44 = vld [vmem:[#allocation2 + $0x30] sm:$0xff]  ;;  %v1506_v45 = vld [vmem:[#allocation10 + $0x38] sm:$0xff]  ;;  %v1503_v48 = vld [vmem:[#allocation10 + $0x20] sm:$0xff] }
  0x36   :  { %v1505_v46 = vld [vmem:[#allocation10 + $0x30] sm:$0xff]  ;;  %v1504_v47 = vld [vmem:[#allocation10 + $0x28] sm:$0xff]  ;;  %v2042_v49 = vld [vmem:[#allocation2 + $0x20] sm:$0xff] }
  0x37   :  { %362 = vmatpush.bf16.msra.mxu0 %v1496_v2  ;;  %1541 = vmatpush.bf16.msra.mxu2 %v1496_v2  ;;  %v2044_v50 = vld [vmem:[#allocation2 + $0x38] sm:$0xff]  ;;  %v2048_v51 = vld [vmem:[#allocation2 + $0x28] sm:$0xff]  ;;  %v1569_v57 = vld [vmem:[#allocation8] ss:$0 sm:$0xff] }
  0x38   :  { %v1502_v52 = vld [vmem:[#allocation10 + $0x18] sm:$0xff]  ;;  %v1501_v53 = vld [vmem:[#allocation10 + $0x10] sm:$0xff]  ;;  %v1500_v54 = vld [vmem:[#allocation10 + $0x8] sm:$0xff] }
  0x39   :  { %v1499_v55 = vld [vmem:[#allocation10] sm:$0xff] }
  0x3b   :  { %363 = vmatpush.bf16.msra.mxu0 %v1495_v3  ;;  %1542 = vmatpush.bf16.msra.mxu2 %v1495_v3 }
  0x3f   :  { %364 = vmatpush.bf16.msra.mxu0 %v1494_v4  ;;  %1543 = vmatpush.bf16.msra.mxu2 %v1494_v4 }
  0x43   :  { %365 = vmatpush.bf16.msra.mxu0 %v1493_v5  ;;  %1544 = vmatpush.bf16.msra.mxu2 %v1493_v5 }
  0x47   :  { %366 = vmatpush.bf16.msra.mxu0 %v1492_v6  ;;  %1545 = vmatpush.bf16.msra.mxu2 %v1492_v6 }
  0x4b   :  { %367 = vmatpush.bf16.msra.mxu0 %v1491_v7  ;;  %1546 = vmatpush.bf16.msra.mxu2 %v1491_v7 }
  0x4e   :  { %368 = vmatmul.bf16.vlgmr.msra.gmra.mxu0 %v1483_v8  ;;  %398 = vmatmul.bf16.vlgmr.msra.gmra.mxu2 %v1489_v9 }
  0x4f   :  { %606 = vmatpush.bf16.msrb.mxu2 %v1506_v45 }
  0x53   :  { %607 = vmatpush.bf16.msrb.mxu2 %v1505_v46 }
  0x57   :  { %608 = vmatpush.bf16.msrb.mxu2 %v1504_v47 }
  0x5b   :  { %609 = vmatpush.bf16.msrb.mxu2 %v1503_v48 }
  0x5e   :  { %373 = vmatmul.bf16.gmra.mxu0 %v1484_v10  ;;  %403 = vmatmul.bf16.gmra.mxu2 %v1490_v11 }
  0x5f   :  { %610 = vmatpush.bf16.msrb.mxu2 %v1502_v52 }
  0x63   :  { %611 = vmatpush.bf16.msrb.mxu2 %v1501_v53 }
  0x67   :  { %612 = vmatpush.bf16.msrb.mxu2 %v1500_v54 }
  0x6b   :  { %613 = vmatpush.bf16.msrb.mxu2 %v1499_v55 }
  0x6e   :  { %378 = vmatmul.bf16.gmra.mxu0 %v1485_v12 }
  0x7e   :  { %383 = vmatmul.bf16.gmra.mxu0 %v1486_v13 }
  0x8e   :  { %388 = vmatmul.bf16.gmra.mxu0 %v1487_v14 }
  0x9e   :  { %393 = vmatmul.bf16.gmra.mxu0 %v1488_v15 }
  0xcb   :  { %v369_v16 = vpop.f32.mrf.mxu0 }
  0xd1   :  { %v399_v17 = vpop.f32.mrf.mxu2 }
  0xd3   :  { %v371_v18 = vpop.f32.mrf.mxu0 }
  0xd4   :  { %v409_v39 = vpack.c.bf16 %v371_v18, %v369_v16 }
  0xd9   :  { %v401_v19 = vpop.f32.mrf.mxu2 }
  0xda   :  { %v415_v26 = vpack.c.bf16 %v401_v19, %v399_v17 }
  0xdb   :  { %v374_v20 = vpop.f32.mrf.mxu0 }
  0xe1   :  { %v404_v21 = vpop.f32.mrf.mxu2 }
  0xe3   :  { %v376_v22 = vpop.f32.mrf.mxu0 }
  0xe4   :  { %v410_v38 = vpack.c.bf16 %v376_v22, %v374_v20 }
  0xe9   :  { %v406_v23 = vpop.f32.mrf.mxu2 }
  0xea   :  { %v416_v24 = vpack.c.bf16 %v406_v23, %v404_v21 }
  0xeb   :  { %v379_v25 = vpop.f32.mrf.mxu0 }
  0xec   :  { %469 = vmatpush.bf16.msra.mxu1 %v416_v24  ;;  %1547 = vmatpush.bf16.msra.mxu3 %v416_v24 }
  0xf0   :  { %470 = vmatpush.bf16.msra.mxu1 %v415_v26  ;;  %1548 = vmatpush.bf16.msra.mxu3 %v415_v26 }
  0xf3   :  { %v381_v27 = vpop.f32.mrf.mxu0 }
  0xf4   :  { %v411_v37 = vpack.c.bf16 %v381_v27, %v379_v25 }
  0xfb   :  { %v384_v28 = vpop.f32.mrf.mxu0 }
 0x103   :  { %v386_v29 = vpop.f32.mrf.mxu0 }
 0x104   :  { %v412_v36 = vpack.c.bf16 %v386_v29, %v384_v28 }
 0x10b   :  { %v389_v30 = vpop.f32.mrf.mxu0 }
 0x113   :  { %v391_v31 = vpop.f32.mrf.mxu0 }
 0x114   :  { %v413_v35 = vpack.c.bf16 %v391_v31, %v389_v30 }
 0x11b   :  { %v394_v32 = vpop.f32.mrf.mxu0 }
 0x123   :  { %v396_v33 = vpop.f32.mrf.mxu0 }
 0x124   :  { %v414_v34 = vpack.c.bf16 %v396_v33, %v394_v32 }
 0x126   :  { %471 = vmatpush.bf16.msra.mxu1 %v414_v34  ;;  %1549 = vmatpush.bf16.msra.mxu3 %v414_v34 }
 0x12a   :  { %472 = vmatpush.bf16.msra.mxu1 %v413_v35  ;;  %1550 = vmatpush.bf16.msra.mxu3 %v413_v35 }
 0x12e   :  { %473 = vmatpush.bf16.msra.mxu1 %v412_v36  ;;  %1551 = vmatpush.bf16.msra.mxu3 %v412_v36 }
 0x132   :  { %474 = vmatpush.bf16.msra.mxu1 %v411_v37  ;;  %1552 = vmatpush.bf16.msra.mxu3 %v411_v37 }
 0x136   :  { %475 = vmatpush.bf16.msra.mxu1 %v410_v38  ;;  %1553 = vmatpush.bf16.msra.mxu3 %v410_v38 }
 0x13a   :  { %476 = vmatpush.bf16.msra.mxu1 %v409_v39  ;;  %1554 = vmatpush.bf16.msra.mxu3 %v409_v39 }
 0x13d   :  { %477 = vmatmul.bf16.vlgmr.msra.gmra.mxu1 %v2027_v40  ;;  %507 = vmatmul.bf16.vlgmr.msra.gmra.mxu3 %v2039_v44 }
 0x14d   :  { %482 = vmatmul.bf16.gmra.mxu1 %v2030_v41  ;;  %512 = vmatmul.bf16.gmra.mxu3 %v2044_v50 }
 0x15d   :  { %487 = vmatmul.bf16.gmra.mxu1 %v2033_v42 }
 0x16d   :  { %492 = vmatmul.bf16.gmra.mxu1 %v2036_v43 }
 0x17d   :  { %497 = vmatmul.bf16.gmra.mxu1 %v2042_v49 }
 0x18d   :  { %502 = vmatmul.bf16.gmra.mxu1 %v2048_v51 }
 0x1ba   :  { %v478_v56 = vpop.f32.mrf.mxu1 }
 0x1bb   :  { %v479_v58 = vadd.f32 %v1569_v57, %v478_v56 }
 0x1bd   :  { %v518_v61 = vmax.f32 %v479_v58, 0.0 }
 0x1c0   :  { %v508_v29 = vpop.f32.mrf.mxu3 }
 0x1c1   :  { %v509_v37 = vadd.f32 %v1569_v57, %v508_v29 }
 0x1c2   :  { %v480_v59 = vpop.f32.mrf.mxu1 }
 0x1c3   :  { %v481_v60 = vadd.f32 %v1569_v57, %v480_v59  ;;  %v530_v45 = vmax.f32 %v509_v37, 0.0 }
 0x1c5   :  { %v519_v62 = vmax.f32 %v481_v60, 0.0 }
 0x1c7   :  { %v534_v63 = vpack.c.bf16 %v519_v62, %v518_v61 }
 0x1c8   :  { %v510_v36 = vpop.f32.mrf.mxu3 }
 0x1c9   :  { %614 = vmatmul.bf16.vlgmr.msrb.gmra.mxu2 %v534_v63  ;;  %v511_v38 = vadd.f32 %v1569_v57, %v510_v36 }
 0x1ca   :  { %v483_v0 = vpop.f32.mrf.mxu1 }
 0x1cb   :  { %v484_v1 = vadd.f32 %v1569_v57, %v483_v0  ;;  %v531_v46 = vmax.f32 %v511_v38, 0.0 }
 0x1cd   :  { %v520_v4 = vmax.f32 %v484_v1, 0.0  ;;  %v540_v47 = vpack.c.bf16 %v531_v46, %v530_v45 }
 0x1d0   :  { %v513_v39 = vpop.f32.mrf.mxu3 }
 0x1d1   :  { %v514_v52 = vadd.f32 %v1569_v57, %v513_v39 }
 0x1d2   :  { %v485_v2 = vpop.f32.mrf.mxu1 }
 0x1d3   :  { %v486_v3 = vadd.f32 %v1569_v57, %v485_v2  ;;  %v532_v54 = vmax.f32 %v514_v52, 0.0 }
 0x1d5   :  { %v521_v5 = vmax.f32 %v486_v3, 0.0 }
 0x1d7   :  { %v535_v6 = vpack.c.bf16 %v521_v5, %v520_v4 }
 0x1d8   :  { %v515_v48 = vpop.f32.mrf.mxu3 }
 0x1d9   :  { %619 = vmatmul.bf16.gmra.mxu2 %v535_v6  ;;  %v516_v53 = vadd.f32 %v1569_v57, %v515_v48 }
 0x1da   :  { %v488_v7 = vpop.f32.mrf.mxu1 }
 0x1db   :  { %v489_v8 = vadd.f32 %v1569_v57, %v488_v7  ;;  %v533_v55 = vmax.f32 %v516_v53, 0.0 }
 0x1dd   :  { %v522_v11 = vmax.f32 %v489_v8, 0.0  ;;  %v541_v56 = vpack.c.bf16 %v533_v55, %v532_v54 }
 0x1e2   :  { %v490_v9 = vpop.f32.mrf.mxu1 }
 0x1e3   :  { %v491_v10 = vadd.f32 %v1569_v57, %v490_v9 }
 0x1e5   :  { %v523_v12 = vmax.f32 %v491_v10, 0.0 }
 0x1e7   :  { %v536_v13 = vpack.c.bf16 %v523_v12, %v522_v11 }
 0x1e9   :  { %624 = vmatmul.bf16.gmra.mxu2 %v536_v13 }
 0x1ea   :  { %v493_v14 = vpop.f32.mrf.mxu1 }
 0x1eb   :  { %v494_v15 = vadd.f32 %v1569_v57, %v493_v14 }
 0x1ed   :  { %v524_v18 = vmax.f32 %v494_v15, 0.0 }
 0x1f2   :  { %v495_v16 = vpop.f32.mrf.mxu1 }
 0x1f3   :  { %v496_v17 = vadd.f32 %v1569_v57, %v495_v16 }
 0x1f5   :  { %v525_v19 = vmax.f32 %v496_v17, 0.0  ;;  %v1514_v17 = vld [vmem:[#allocation13 + $0x38] sm:$0xff] }
 0x1f6   :  { %804 = vmatpush.bf16.msrb.mxu0 %v1514_v17 }
 0x1f7   :  { %v537_v20 = vpack.c.bf16 %v525_v19, %v524_v18  ;;  %v1513_v18 = vld [vmem:[#allocation13 + $0x30] sm:$0xff]  ;;  %v1512_v19 = vld [vmem:[#allocation13 + $0x28] sm:$0xff] }
 0x1f9   :  { %629 = vmatmul.bf16.gmra.mxu2 %v537_v20  ;;  %v1511_v20 = vld [vmem:[#allocation13 + $0x20] sm:$0xff] }
 0x1fa   :  { %v498_v21 = vpop.f32.mrf.mxu1  ;;  %805 = vmatpush.bf16.msrb.mxu0 %v1513_v18 }
 0x1fb   :  { %v499_v22 = vadd.f32 %v1569_v57, %v498_v21  ;;  %v1510_v21 = vld [vmem:[#allocation13 + $0x18] sm:$0xff] }
 0x1fd   :  { %v526_v25 = vmax.f32 %v499_v22, 0.0  ;;  %v1509_v22 = vld [vmem:[#allocation13 + $0x10] sm:$0xff] }
 0x1fe   :  { %806 = vmatpush.bf16.msrb.mxu0 %v1512_v19 }
 0x202   :  { %v500_v23 = vpop.f32.mrf.mxu1  ;;  %807 = vmatpush.bf16.msrb.mxu0 %v1511_v20 }
 0x203   :  { %v501_v24 = vadd.f32 %v1569_v57, %v500_v23  ;;  %v1508_v23 = vld [vmem:[#allocation13 + $0x8] sm:$0xff] }
 0x205   :  { %v527_v26 = vmax.f32 %v501_v24, 0.0  ;;  %v1507_v24 = vld [vmem:[#allocation13] sm:$0xff] }
 0x206   :  { %808 = vmatpush.bf16.msrb.mxu0 %v1510_v21 }
 0x207   :  { %v538_v27 = vpack.c.bf16 %v527_v26, %v526_v25  ;;  %v1570_v26 = vld [vmem:[#allocation11] ss:$0 sm:$0xff] }
 0x209   :  { %634 = vmatmul.bf16.gmra.mxu2 %v538_v27 }
 0x20a   :  { %v503_v28 = vpop.f32.mrf.mxu1  ;;  %809 = vmatpush.bf16.msrb.mxu0 %v1509_v22 }
 0x20b   :  { %v504_v30 = vadd.f32 %v1569_v57, %v503_v28 }
 0x20d   :  { %v528_v33 = vmax.f32 %v504_v30, 0.0 }
 0x20e   :  { %810 = vmatpush.bf16.msrb.mxu0 %v1508_v23 }
 0x212   :  { %v505_v31 = vpop.f32.mrf.mxu1  ;;  %811 = vmatpush.bf16.msrb.mxu0 %v1507_v24 }
 0x213   :  { %v506_v32 = vadd.f32 %v1569_v57, %v505_v31 }
 0x215   :  { %v529_v34 = vmax.f32 %v506_v32, 0.0 }
 0x217   :  { %v539_v35 = vpack.c.bf16 %v529_v34, %v528_v33 }
 0x219   :  { %639 = vmatmul.bf16.gmra.mxu2 %v539_v35 }
 0x229   :  { %644 = vmatmul.bf16.gmra.mxu2 %v540_v47 }
 0x239   :  { %649 = vmatmul.bf16.gmra.mxu2 %v541_v56 }
 0x24c   :  { %v615_v58 = vpop.f32.mrf.mxu2 }
 0x254   :  { %v617_v59 = vpop.f32.mrf.mxu2 }
 0x255   :  { %v655_v60 = vpack.c.bf16 %v617_v59, %v615_v58 }
 0x25c   :  { %v620_v61 = vpop.f32.mrf.mxu2 }
 0x264   :  { %v622_v62 = vpop.f32.mrf.mxu2 }
 0x265   :  { %v656_v63 = vpack.c.bf16 %v622_v62, %v620_v61 }
 0x26c   :  { %v625_v0 = vpop.f32.mrf.mxu2 }
 0x274   :  { %v627_v1 = vpop.f32.mrf.mxu2 }
 0x275   :  { %v657_v2 = vpack.c.bf16 %v627_v1, %v625_v0 }
 0x27c   :  { %v630_v3 = vpop.f32.mrf.mxu2 }
 0x284   :  { %v632_v4 = vpop.f32.mrf.mxu2 }
 0x285   :  { %v658_v5 = vpack.c.bf16 %v632_v4, %v630_v3 }
 0x28c   :  { %v635_v6 = vpop.f32.mrf.mxu2 }
 0x294   :  { %v637_v7 = vpop.f32.mrf.mxu2 }
 0x295   :  { %v659_v16 = vpack.c.bf16 %v637_v7, %v635_v6 }
 0x29c   :  { %v640_v8 = vpop.f32.mrf.mxu2 }
 0x2a4   :  { %v642_v57 = vpop.f32.mrf.mxu2 }
 0x2a5   :  { %v660_v15 = vpack.c.bf16 %v642_v57, %v640_v8 }
 0x2ac   :  { %v645_v9 = vpop.f32.mrf.mxu2 }
 0x2b4   :  { %v647_v10 = vpop.f32.mrf.mxu2 }
 0x2b5   :  { %v661_v14 = vpack.c.bf16 %v647_v10, %v645_v9 }
 0x2bc   :  { %v650_v11 = vpop.f32.mrf.mxu2 }
 0x2c4   :  { %v652_v12 = vpop.f32.mrf.mxu2 }
 0x2c5   :  { %v662_v13 = vpack.c.bf16 %v652_v12, %v650_v11 }
 0x2c7   :  { %667 = vmatpush.bf16.msrb.mxu3 %v662_v13 }
 0x2cb   :  { %668 = vmatpush.bf16.msrb.mxu3 %v661_v14 }
 0x2cf   :  { %669 = vmatpush.bf16.msrb.mxu3 %v660_v15 }
 0x2d3   :  { %670 = vmatpush.bf16.msrb.mxu3 %v659_v16 }
 0x2d7   :  { %671 = vmatpush.bf16.msrb.mxu3 %v658_v5 }
 0x2db   :  { %672 = vmatpush.bf16.msrb.mxu3 %v657_v2 }
 0x2df   :  { %673 = vmatpush.bf16.msrb.mxu3 %v656_v63 }
 0x2e3   :  { %674 = vmatpush.bf16.msrb.mxu3 %v655_v60 }
 0x2e6   :  { %675 = vmatmul.bf16.vlgmr.msrb.gmra.mxu3 %v2027_v40 }
 0x2f6   :  { %680 = vmatmul.bf16.gmra.mxu3 %v2030_v41 }
 0x306   :  { %685 = vmatmul.bf16.gmra.mxu3 %v2033_v42 }
 0x316   :  { %690 = vmatmul.bf16.gmra.mxu3 %v2036_v43 }
 0x326   :  { %695 = vmatmul.bf16.gmra.mxu3 %v2042_v49 }
 0x336   :  { %700 = vmatmul.bf16.gmra.mxu3 %v2048_v51 }
 0x346   :  { %705 = vmatmul.bf16.gmra.mxu3 %v2039_v44 }
 0x356   :  { %710 = vmatmul.bf16.gmra.mxu3 %v2044_v50 }
 0x369   :  { %v676_v25 = vpop.f32.mrf.mxu3 }
 0x36a   :  { %v677_v27 = vadd.f32 %v1570_v26, %v676_v25 }
 0x36c   :  { %v716_v30 = vmax.f32 %v677_v27, 0.0 }
 0x371   :  { %v678_v28 = vpop.f32.mrf.mxu3 }
 0x372   :  { %v679_v29 = vadd.f32 %v1570_v26, %v678_v28 }
 0x374   :  { %v717_v31 = vmax.f32 %v679_v29, 0.0 }
 0x376   :  { %v732_v32 = vpack.c.bf16 %v717_v31, %v716_v30 }
 0x378   :  { %812 = vmatmul.bf16.vlgmr.msrb.gmra.mxu0 %v732_v32 }
 0x379   :  { %v681_v33 = vpop.f32.mrf.mxu3 }
 0x37a   :  { %v682_v34 = vadd.f32 %v1570_v26, %v681_v33 }
 0x37c   :  { %v718_v37 = vmax.f32 %v682_v34, 0.0 }
 0x381   :  { %v683_v35 = vpop.f32.mrf.mxu3 }
 0x382   :  { %v684_v36 = vadd.f32 %v1570_v26, %v683_v35 }
 0x384   :  { %v719_v38 = vmax.f32 %v684_v36, 0.0 }
 0x386   :  { %v733_v39 = vpack.c.bf16 %v719_v38, %v718_v37 }
 0x388   :  { %817 = vmatmul.bf16.gmra.mxu0 %v733_v39 }
 0x389   :  { %v686_v45 = vpop.f32.mrf.mxu3 }
 0x38a   :  { %v687_v46 = vadd.f32 %v1570_v26, %v686_v45 }
 0x38c   :  { %v720_v52 = vmax.f32 %v687_v46, 0.0 }
 0x391   :  { %v688_v47 = vpop.f32.mrf.mxu3 }
 0x392   :  { %v689_v48 = vadd.f32 %v1570_v26, %v688_v47 }
 0x394   :  { %v721_v53 = vmax.f32 %v689_v48, 0.0 }
 0x396   :  { %v734_v54 = vpack.c.bf16 %v721_v53, %v720_v52 }
 0x398   :  { %822 = vmatmul.bf16.gmra.mxu0 %v734_v54 }
 0x399   :  { %v691_v55 = vpop.f32.mrf.mxu3 }
 0x39a   :  { %v692_v56 = vadd.f32 %v1570_v26, %v691_v55 }
 0x39c   :  { %v722_v60 = vmax.f32 %v692_v56, 0.0 }
 0x3a1   :  { %v693_v58 = vpop.f32.mrf.mxu3 }
 0x3a2   :  { %v694_v59 = vadd.f32 %v1570_v26, %v693_v58 }
 0x3a4   :  { %v723_v61 = vmax.f32 %v694_v59, 0.0 }
 0x3a6   :  { %v735_v62 = vpack.c.bf16 %v723_v61, %v722_v60  ;;  %v1571_v60 = vld [vmem:[#allocation14] ss:$0 sm:$0xff] }
 0x3a8   :  { %827 = vmatmul.bf16.gmra.mxu0 %v735_v62 }
 0x3a9   :  { %v696_v63 = vpop.f32.mrf.mxu3 }
 0x3aa   :  { %v697_v0 = vadd.f32 %v1570_v26, %v696_v63 }
 0x3ac   :  { %v724_v3 = vmax.f32 %v697_v0, 0.0 }
 0x3b1   :  { %v698_v1 = vpop.f32.mrf.mxu3 }
 0x3b2   :  { %v699_v2 = vadd.f32 %v1570_v26, %v698_v1 }
 0x3b4   :  { %v725_v4 = vmax.f32 %v699_v2, 0.0 }
 0x3b6   :  { %v736_v5 = vpack.c.bf16 %v725_v4, %v724_v3 }
 0x3b8   :  { %832 = vmatmul.bf16.gmra.mxu0 %v736_v5 }
 0x3b9   :  { %v701_v6 = vpop.f32.mrf.mxu3 }
 0x3ba   :  { %v702_v7 = vadd.f32 %v1570_v26, %v701_v6 }
 0x3bc   :  { %v726_v9 = vmax.f32 %v702_v7, 0.0 }
 0x3c1   :  { %v703_v8 = vpop.f32.mrf.mxu3 }
 0x3c2   :  { %v704_v57 = vadd.f32 %v1570_v26, %v703_v8 }
 0x3c4   :  { %v727_v10 = vmax.f32 %v704_v57, 0.0 }
 0x3c6   :  { %v737_v11 = vpack.c.bf16 %v727_v10, %v726_v9 }
 0x3c8   :  { %837 = vmatmul.bf16.gmra.mxu0 %v737_v11 }
 0x3c9   :  { %v706_v12 = vpop.f32.mrf.mxu3 }
 0x3ca   :  { %v707_v13 = vadd.f32 %v1570_v26, %v706_v12 }
 0x3cc   :  { %v728_v16 = vmax.f32 %v707_v13, 0.0 }
 0x3d1   :  { %v708_v14 = vpop.f32.mrf.mxu3 }
 0x3d2   :  { %v709_v15 = vadd.f32 %v1570_v26, %v708_v14 }
 0x3d4   :  { %v729_v17 = vmax.f32 %v709_v15, 0.0 }
 0x3d6   :  { %v738_v18 = vpack.c.bf16 %v729_v17, %v728_v16 }
 0x3d8   :  { %842 = vmatmul.bf16.gmra.mxu0 %v738_v18 }
 0x3d9   :  { %v711_v19 = vpop.f32.mrf.mxu3 }
 0x3da   :  { %v712_v20 = vadd.f32 %v1570_v26, %v711_v19 }
 0x3dc   :  { %v730_v23 = vmax.f32 %v712_v20, 0.0 }
 0x3e1   :  { %v713_v21 = vpop.f32.mrf.mxu3 }
 0x3e2   :  { %v714_v22 = vadd.f32 %v1570_v26, %v713_v21 }
 0x3e4   :  { %v731_v24 = vmax.f32 %v714_v22, 0.0 }
 0x3e6   :  { %v739_v25 = vpack.c.bf16 %v731_v24, %v730_v23 }
 0x3e8   :  { %847 = vmatmul.bf16.gmra.mxu0 %v739_v25 }
 0x3f5   :  { %v813_v27 = vpop.f32.mrf.mxu0 }
 0x3fd   :  { %v815_v28 = vpop.f32.mrf.mxu0 }
 0x3fe   :  { %v853_v29 = vpack.c.bf16 %v815_v28, %v813_v27 }
 0x405   :  { %v818_v30 = vpop.f32.mrf.mxu0 }
 0x40d   :  { %v820_v31 = vpop.f32.mrf.mxu0 }
 0x40e   :  { %v854_v32 = vpack.c.bf16 %v820_v31, %v818_v30 }
 0x415   :  { %v823_v33 = vpop.f32.mrf.mxu0 }
 0x41d   :  { %v825_v34 = vpop.f32.mrf.mxu0 }
 0x41e   :  { %v855_v35 = vpack.c.bf16 %v825_v34, %v823_v33  ;;  %v1530_v33 = vld [vmem:[#allocation17 + $0x38] sm:$0xff] }
 0x41f   :  { %1034 = vmatpush.bf16.msra.mxu3 %v1530_v33 }
 0x425   :  { %v828_v36 = vpop.f32.mrf.mxu0 }
 0x42d   :  { %v830_v37 = vpop.f32.mrf.mxu0 }
 0x42e   :  { %v856_v38 = vpack.c.bf16 %v830_v37, %v828_v36  ;;  %v1529_v36 = vld [vmem:[#allocation17 + $0x30] sm:$0xff] }
 0x42f   :  { %1035 = vmatpush.bf16.msra.mxu3 %v1529_v36 }
 0x435   :  { %v833_v39 = vpop.f32.mrf.mxu0 }
 0x43d   :  { %v835_v45 = vpop.f32.mrf.mxu0 }
 0x43e   :  { %v857_v58 = vpack.c.bf16 %v835_v45, %v833_v39 }
 0x445   :  { %v838_v46 = vpop.f32.mrf.mxu0 }
 0x44d   :  { %v840_v26 = vpop.f32.mrf.mxu0 }
 0x44e   :  { %v858_v56 = vpack.c.bf16 %v840_v26, %v838_v46  ;;  %v1528_v26 = vld [vmem:[#allocation17 + $0x28] sm:$0xff] }
 0x44f   :  { %1036 = vmatpush.bf16.msra.mxu3 %v1528_v26 }
 0x455   :  { %v843_v47 = vpop.f32.mrf.mxu0 }
 0x45d   :  { %v845_v48 = vpop.f32.mrf.mxu0 }
 0x45e   :  { %v859_v55 = vpack.c.bf16 %v845_v48, %v843_v47 }
 0x465   :  { %v848_v52 = vpop.f32.mrf.mxu0 }
 0x46d   :  { %v850_v53 = vpop.f32.mrf.mxu0 }
 0x46e   :  { %v860_v54 = vpack.c.bf16 %v850_v53, %v848_v52  ;;  %v1527_v53 = vld [vmem:[#allocation17 + $0x20] sm:$0xff] }
 0x46f   :  { %1037 = vmatpush.bf16.msra.mxu3 %v1527_v53 }
 0x470   :  { %865 = vmatpush.bf16.msrb.mxu1 %v860_v54 }
 0x474   :  { %866 = vmatpush.bf16.msrb.mxu1 %v859_v55  ;;  %v1526_v55 = vld [vmem:[#allocation17 + $0x18] sm:$0xff] }
 0x475   :  { %1038 = vmatpush.bf16.msra.mxu3 %v1526_v55 }
 0x478   :  { %867 = vmatpush.bf16.msrb.mxu1 %v858_v56  ;;  %v1525_v56 = vld [vmem:[#allocation17 + $0x10] sm:$0xff] }
 0x479   :  { %1039 = vmatpush.bf16.msra.mxu3 %v1525_v56 }
 0x47c   :  { %868 = vmatpush.bf16.msrb.mxu1 %v857_v58  ;;  %v1524_v58 = vld [vmem:[#allocation17 + $0x8] sm:$0xff] }
 0x47d   :  { %1040 = vmatpush.bf16.msra.mxu3 %v1524_v58 }
 0x480   :  { %869 = vmatpush.bf16.msrb.mxu1 %v856_v38 }
 0x484   :  { %870 = vmatpush.bf16.msrb.mxu1 %v855_v35 }
 0x488   :  { %871 = vmatpush.bf16.msrb.mxu1 %v854_v32 }
 0x48c   :  { %872 = vmatpush.bf16.msrb.mxu1 %v853_v29 }
 0x48f   :  { %873 = vmatmul.bf16.vlgmr.msrb.gmra.mxu1 %v2027_v40 }
 0x49f   :  { %878 = vmatmul.bf16.gmra.mxu1 %v2030_v41 }
 0x4af   :  { %883 = vmatmul.bf16.gmra.mxu1 %v2033_v42 }
 0x4bf   :  { %888 = vmatmul.bf16.gmra.mxu1 %v2036_v43 }
 0x4cf   :  { %893 = vmatmul.bf16.gmra.mxu1 %v2042_v49 }
 0x4df   :  { %898 = vmatmul.bf16.gmra.mxu1 %v2048_v51 }
 0x4ef   :  { %903 = vmatmul.bf16.gmra.mxu1 %v2039_v44 }
 0x4ff   :  { %908 = vmatmul.bf16.gmra.mxu1 %v2044_v50 }
 0x50c   :  { %v874_v59 = vpop.f32.mrf.mxu1 }
 0x50d   :  { %v875_v61 = vadd.f32 %v1571_v60, %v874_v59  ;;  %v1522_v59 = vld [vmem:[#allocation16 + $0x38] sm:$0xff] }
 0x50f   :  { %v914_v40 = vmax.f32 %v875_v61, 0.0  ;;  %v930_v61 = vld [vmem:[%s2093_s8] sm:$0xf] }
 0x514   :  { %v876_v62 = vpop.f32.mrf.mxu1 }
 0x515   :  { %v877_v63 = vadd.f32 %v1571_v60, %v876_v62  ;;  %v1521_v62 = vld [vmem:[#allocation16 + $0x30] sm:$0xff] }
 0x517   :  { %v915_v0 = vmax.f32 %v877_v63, 0.0  ;;  %v1520_v63 = vld [vmem:[#allocation16 + $0x28] sm:$0xff] }
 0x519   :  { %v2067_v41 = vpack.c.bf16 %v915_v0, %v914_v40  ;;  %v1519_v40 = vld [vmem:[#allocation16 + $0x20] sm:$0xff]  ;;  %v1518_v0 = vld [vmem:[#allocation16 + $0x18] sm:$0xff] }
 0x51c   :  { %v879_v42 = vpop.f32.mrf.mxu1 }
 0x51d   :  { %v880_v1 = vadd.f32 %v1571_v60, %v879_v42  ;;  %v1517_v42 = vld [vmem:[#allocation16 + $0x10] sm:$0xff] }
 0x51f   :  { %v916_v49 = vmax.f32 %v880_v1, 0.0  ;;  %v1516_v1 = vld [vmem:[#allocation16 + $0x8] sm:$0xff] }
 0x524   :  { %v881_v43 = vpop.f32.mrf.mxu1 }
 0x525   :  { %v882_v2 = vadd.f32 %v1571_v60, %v881_v43  ;;  %v1515_v43 = vld [vmem:[#allocation16] sm:$0xff] }
 0x527   :  { %v917_v3 = vmax.f32 %v882_v2, 0.0  ;;  %v1538_v2 = vld [vmem:[#allocation19 + $0x38] sm:$0xff] }
 0x529   :  { %v932_v51 = vpack.c.bf16 %v917_v3, %v916_v49  ;;  %v1537_v49 = vld [vmem:[#allocation19 + $0x30] sm:$0xff]  ;;  %v1536_v3 = vld [vmem:[#allocation19 + $0x28] sm:$0xff] }
 0x52c   :  { %v884_v4 = vpop.f32.mrf.mxu1 }
 0x52d   :  { %v885_v44 = vadd.f32 %v1571_v60, %v884_v4  ;;  %v1534_v4 = vld [vmem:[#allocation19 + $0x18] sm:$0xff] }
 0x52f   :  { %v918_v6 = vmax.f32 %v885_v44, 0.0  ;;  %v1533_v44 = vld [vmem:[#allocation19 + $0x10] sm:$0xff] }
 0x534   :  { %v886_v5 = vpop.f32.mrf.mxu1 }
 0x535   :  { %v887_v50 = vadd.f32 %v1571_v60, %v886_v5 }
 0x537   :  { %v919_v7 = vmax.f32 %v887_v50, 0.0 }
 0x539   :  { %v933_v8 = vpack.c.bf16 %v919_v7, %v918_v6 }
 0x53c   :  { %v889_v57 = vpop.f32.mrf.mxu1 }
 0x53d   :  { %v890_v9 = vadd.f32 %v1571_v60, %v889_v57 }
 0x53f   :  { %v920_v12 = vmax.f32 %v890_v9, 0.0  ;;  %v1531_v9 = vld [vmem:[#allocation19] sm:$0xff] }
 0x544   :  { %v891_v10 = vpop.f32.mrf.mxu1 }
 0x545   :  { %v892_v11 = vadd.f32 %v1571_v60, %v891_v10  ;;  %v1572_v10 = vld [vmem:[%s2097_s12] ss:$0 sm:$0xff] }
 0x547   :  { %v921_v13 = vmax.f32 %v892_v11, 0.0 }
 0x549   :  { %v934_v14 = vpack.c.bf16 %v921_v13, %v920_v12 }
 0x54c   :  { %v894_v15 = vpop.f32.mrf.mxu1 }
 0x54d   :  { %v895_v45 = vadd.f32 %v1571_v60, %v894_v15 }
 0x54f   :  { %v922_v52 = vmax.f32 %v895_v45, 0.0 }
 0x554   :  { %v896_v16 = vpop.f32.mrf.mxu1 }
 0x555   :  { %v897_v37 = vadd.f32 %v1571_v60, %v896_v16 }
 0x557   :  { %v923_v47 = vmax.f32 %v897_v37, 0.0 }
 0x559   :  { %v935_v54 = vpack.c.bf16 %v923_v47, %v922_v52 }
 0x55c   :  { %v899_v17 = vpop.f32.mrf.mxu1 }
 0x55d   :  { %v900_v34 = vadd.f32 %v1571_v60, %v899_v17  ;;  %v1573_v17 = vld [vmem:[%s2099_s14] ss:$0 sm:$0xff] }
 0x55f   :  { %v924_v46 = vmax.f32 %v900_v34, 0.0 }
 0x564   :  { %v901_v18 = vpop.f32.mrf.mxu1 }
 0x565   :  { %v902_v30 = vadd.f32 %v1571_v60, %v901_v18 }
 0x567   :  { %v925_v38 = vmax.f32 %v902_v30, 0.0 }
 0x569   :  { %v936_v48 = vpack.c.bf16 %v925_v38, %v924_v46 }
 0x56c   :  { %v904_v19 = vpop.f32.mrf.mxu1 }
 0x56d   :  { %v905_v27 = vadd.f32 %v1571_v60, %v904_v19 }
 0x56f   :  { %v926_v35 = vmax.f32 %v905_v27, 0.0 }
 0x574   :  { %v906_v20 = vpop.f32.mrf.mxu1 }
 0x575   :  { %v907_v24 = vadd.f32 %v1571_v60, %v906_v20 }
 0x577   :  { %v927_v31 = vmax.f32 %v907_v24, 0.0 }
 0x579   :  { %v937_v39 = vpack.c.bf16 %v927_v31, %v926_v35 }
 0x57c   :  { %v909_v21 = vpop.f32.mrf.mxu1 }
 0x57d   :  { %v910_v22 = vadd.f32 %v1571_v60, %v909_v21 }
 0x57f   :  { %v928_v28 = vmax.f32 %v910_v22, 0.0 }
 0x584   :  { %v911_v23 = vpop.f32.mrf.mxu1 }
 0x585   :  { %v912_v25 = vadd.f32 %v1571_v60, %v911_v23  ;;  %v1523_v60 = vld [vmem:[#allocation17] sm:$0xff] }
 0x586   :  { %1041 = vmatpush.bf16.msra.mxu3 %v1523_v60 }
 0x587   :  { %v929_v29 = vmax.f32 %v912_v25, 0.0 }
 0x589   :  { %v938_v32 = vpack.c.bf16 %v929_v29, %v928_v28 }
 0x58a   :  { %1183 = vmatpush.bf16.msrb.mxu3 %v1538_v2 }
 0x58b   :  { %939 = vmatpush.bf16.msra.mxu2 %v938_v32 }
 0x58e   :  { %1184 = vmatpush.bf16.msrb.mxu3 %v1537_v49 }
 0x58f   :  { %940 = vmatpush.bf16.msra.mxu2 %v937_v39 }
 0x592   :  { %1185 = vmatpush.bf16.msrb.mxu3 %v1536_v3 }
 0x593   :  { %941 = vmatpush.bf16.msra.mxu2 %v936_v48 }
 0x597   :  { %942 = vmatpush.bf16.msra.mxu2 %v935_v54 }
 0x59b   :  { %943 = vmatpush.bf16.msra.mxu2 %v934_v14 }
 0x59f   :  { %944 = vmatpush.bf16.msra.mxu2 %v933_v8  ;;  %v1532_v8 = vld [vmem:[#allocation19 + $0x8] sm:$0xff] }
 0x5a3   :  { %945 = vmatpush.bf16.msra.mxu2 %v932_v51  ;;  %v1535_v51 = vld [vmem:[#allocation19 + $0x20] sm:$0xff] }
 0x5a4   :  { %1186 = vmatpush.bf16.msrb.mxu3 %v1535_v51 }
 0x5a7   :  { %946 = vmatpush.bf16.msra.mxu2 %v2067_v41  ;;  %v969_v41 = vld [vmem:[%s2094_s9] sm:$0xf] }
 0x5a8   :  { %1042 = vmatmul.bf16.vlgmr.msra.gmra.mxu3 %v969_v41 }
 0x5a9   :  { %1187 = vmatpush.bf16.msrb.mxu3 %v1534_v4 }
 0x5aa   :  { %947 = vmatmul.bf16.vlgmr.msra.gmra.mxu2 %v930_v61 }
 0x5ab   :  { %1095 = vmatpush.bf16.msrb.mxu2 %v1522_v59 }
 0x5ad   :  { %1188 = vmatpush.bf16.msrb.mxu3 %v1533_v44 }
 0x5af   :  { %1096 = vmatpush.bf16.msrb.mxu2 %v1521_v62 }
 0x5b1   :  { %1189 = vmatpush.bf16.msrb.mxu3 %v1532_v8 }
 0x5b3   :  { %1097 = vmatpush.bf16.msrb.mxu2 %v1520_v63 }
 0x5b5   :  { %1190 = vmatpush.bf16.msrb.mxu3 %v1531_v9 }
 0x5b7   :  { %1098 = vmatpush.bf16.msrb.mxu2 %v1519_v40 }
 0x5bb   :  { %1099 = vmatpush.bf16.msrb.mxu2 %v1518_v0 }
 0x5bf   :  { %1100 = vmatpush.bf16.msrb.mxu2 %v1517_v42 }
 0x5c3   :  { %1101 = vmatpush.bf16.msrb.mxu2 %v1516_v1 }
 0x5c7   :  { %1102 = vmatpush.bf16.msrb.mxu2 %v1515_v43 }
 0x62b   :  { %v1043_v7 = vpop.f32.mrf.mxu3 }
 0x62d   :  { %v948_v5 = vpop.f32.mrf.mxu2 }
 0x62e   :  { %v952_v50 = vpack.c.bf16 %v948_v5, %v948_v5 }
 0x630   :  { %1103 = vmatmul.bf16.vlgmr.msrb.gmra.mxu2 %v952_v50 }
 0x633   :  { %v1045_v57 = vpop.f32.mrf.mxu3 }
 0x635   :  { %v950_v6 = vpop.f32.mrf.mxu2 }
 0x6b3   :  { %v1104_v11 = vpop.f32.mrf.mxu2 }
 0x6b4   :  { %v1105_v12 = vadd.f32 %v1104_v11, %v1043_v7 }
 0x6b6   :  { %v1112_v13 = vadd.f32 %v1572_v10, %v1105_v12 }
 0x6b8   :  { %v1113_v14 = vmax.f32 %v1112_v13, 0.0 }
 0x6ba   :  { %v1114_v15 = vpack.c.bf16 %v1113_v14, %v1113_v14 }
 0x6bb   :  { %v1106_v16 = vpop.f32.mrf.mxu2 }
 0x6bc   :  { %1191 = vmatmul.bf16.vlgmr.msrb.gmra.mxu3 %v1114_v15 }
 0x73f   :  { %v1192_v18 = vpop.f32.mrf.mxu3 }
 0x740   :  { %v1193_v19 = vadd.f32 %v1573_v17, %v1192_v18 }
 0x742   :  { %1196 = vst [vmem:[#allocation20] sm:$0xff] %v1193_v19 }
 0x743   :  { %1207 = dma.vmem_to_hbm [thread:$0]  %s1203_s21, 128, %s1205_s2, [#allocation4]  }
 0x747   :  { %v1194_v20 = vpop.f32.mrf.mxu3 }
 0x748   :  { %1874 = dma.done.wait [#allocation4], 128  }
 0x749   :  { %1875 = vsyncadd [#allocation4], 4294967168 }
 0x74a   :  { %1212 = vsyncpa [#allocation3], 1 }
 0x74b   :  { %1213 = vsyncpa [#allocation6], 1 }
 0x74c   :  { %1214 = vsyncpa [#allocation9], 1 }
 0x74d   :  { %1215 = vsyncpa [#allocation12], 1 }
 0x74e   :  { %1216 = vsyncpa [#allocation15], 1 }
 0x74f   :  { %1217 = vsyncpa [#allocation18], 1 }
 0x750   :  { %1218 = vsyncpa [#allocation4], 1 }

</bundles_post_ra>
